<compile_context>
chip_gen: v5e
topology: v5e:2x2
jax: 0.10.0
libtpu: 0.0.40
codegen_flags: <defaults>
</compile_context>

<pallas_src>
import functools

import jax
import jax.numpy as jnp
from jax.experimental import pallas as pl
from jax.experimental.pallas import tpu as pltpu


def _round_up(x, m):
    return ((x + m - 1) // m) * m


def _vmem_capacity_bytes():
    """Per-core VMEM capacity; conservative (v7x) fallback if the query fails."""
    try:
        info = pltpu.get_tpu_info()
        cap = getattr(info, "vmem_capacity_bytes", None)
        if cap:
            return int(cap)
    except Exception:
        pass
    return 64 * 1024 * 1024


def _ce_boost_kernel(labels_ref, data_ref, out_ref,
                     logits_ref, weights_ref, nlab_ref, acc_ref, *,
                     num_channels, logit_width, smoothing, boost,
                     rows_valid, row_tile, ragged):
    j = pl.program_id(1)          # row-tile index
    c = pl.program_id(2)          # ensemble-channel index (innermost, "arbitrary")
    tn = row_tile
    v = logit_width

    # Mask the ragged tail of the last row tile BEFORE it can enter exp/log:
    # masking labels alone would still let 0 * NaN from garbage tail reads
    # poison the tile sum.
    if ragged:
        row_ids = j * tn + jax.lax.broadcasted_iota(jnp.int32, (tn, 1), 0)
        valid = row_ids < rows_valid                              # (tn, 1) bool
        x = jnp.where(valid, data_ref[0, 0].astype(jnp.float32), 0.0)
    else:
        x = data_ref[0, 0].astype(jnp.float32)

    # Per-tile init: smoothed (negated) one-hot labels, zero logits, unit
    # boosted weights, zero entropy accumulator.  Computed once per row tile
    # and carried in VMEM scratch across the channel grid axis.
    @pl.when(c == 0)
    def _init():
        col = jax.lax.broadcasted_iota(jnp.int32, (tn, v), 1)
        onehot = (col == labels_ref[0]).astype(jnp.float32)
        lab = (1.0 - smoothing) * onehot + (smoothing / v)
        if ragged:
            lab = jnp.where(valid, lab, 0.0)
        nlab_ref[...] = -lab
        logits_ref[...] = jnp.zeros_like(logits_ref)
        weights_ref[...] = jnp.ones_like(weights_ref)
        acc_ref[...] = jnp.zeros_like(acc_ref)

    # Additive logits across ensemble channels.
    logits = logits_ref[...] + x
    logits_ref[...] = logits

    # log_softmax = logits - (m + log(sum(exp(logits - m))))   (no carried
    # `shifted` intermediate across the reduce).
    m = jnp.max(logits, axis=-1, keepdims=True)
    lse = m + jnp.log(jnp.sum(jnp.exp(logits - m), axis=-1, keepdims=True))
    entropy = nlab_ref[...] * (logits - lse)        # = -labels * log_softmax

    acc_ref[...] = acc_ref[...] + entropy * weights_ref[...]
    weights_ref[...] = entropy * (1.0 - boost) + boost

    # Lane-dense per-tile partial: one unmasked full-vreg store per row tile,
    # written only on the last channel step (standard accumulator pattern).
    @pl.when(c == num_channels - 1)
    def _finalize():
        partial = jnp.sum(acc_ref[...]) * (1.0 / v)
        out_ref[...] = jnp.broadcast_to(partial, (1, 1, 8, 128))


def cross_entropy_additive_boost(data, labels, *, logit_width,
                                 ensemble_channel=1, label_smoothing=0.0,
                                 boost_smoothing=0.3, max_row_tile=2048):
    """data: (..., C at `ensemble_channel`, ..., logit_width); labels: int class ids."""
    # TODO(synk): pre-one-hot float `labels` (also accepted by the torch
    # module) are not handled here; only integer class indices are supported.
    assert jnp.issubdtype(labels.dtype, jnp.integer), "only integer labels supported"

    ndim = data.ndim
    ch = ensemble_channel % ndim
    assert ch != ndim - 1, "ensemble axis must differ from the logit axis"
    v = data.shape[-1]
    assert v == logit_width
    num_c = data.shape[ch]

    pre = 1
    for d in data.shape[:ch]:
        pre *= d
    post = 1
    for d in data.shape[ch + 1:-1]:
        post *= d

    # Metadata-only reshapes (adjacent-axis merges): no HBM copy of `data`.
    data4 = data.reshape(pre, num_c, post, v)
    labels3 = labels.reshape(pre, post, 1).astype(jnp.int32)

    # --- Row-tile selection: generation-aware VMEM budget -------------------
    itemsize = jnp.dtype(data.dtype).itemsize
    vmem_cap = _vmem_capacity_bytes()
    budget = min(int(0.55 * vmem_cap), 96 * 1024 * 1024)

    per_row = (2 * v * itemsize        # double-buffered data block
               + 4 * v * 4             # logits / weights / -labels / acc scratch
               + 3 * v * 4             # f32 temporaries (x, entropy, weighted)
               + 8 * 512)              # lane-padded (tile, 1) buffers
    max_rows = max(8, (budget // per_row) // 8 * 8)
    tile = max(8, (min(int(max_row_tile), int(max_rows)) // 8) * 8)
    if tile >= post:
        tile = post
        # Guarantee >= 2 row tiles when pre == 1 so the "parallel" axes can
        # shard across v7x's two TensorCores.
        if pre == 1 and post > 8:
            tile = min(post, _round_up(pl.cdiv(post, 2), 8))
    num_tiles = pl.cdiv(post, tile)
    ragged = (post % tile) != 0

    # Explicit VMEM limit: blocks + scratch + temporaries + headroom.
    need = (2 * tile * v * itemsize        # data block (double-buffered)
            + 2 * tile * 512               # labels block (lane-padded, db)
            + 4 * tile * v * 4             # carried f32 scratch
            + 3 * tile * v * 4             # f32 temporaries
            + 6 * tile * 512               # (tile, 1) f32 temporaries
            + 2 * 8 * 128 * 4)             # output block (db)
    vmem_limit = min(max(int(need * 1.25), 32 * 1024 * 1024),
                     int(0.9 * vmem_cap))

    kernel = functools.partial(
        _ce_boost_kernel,
        num_channels=num_c,
        logit_width=v,
        smoothing=float(label_smoothing),
        boost=float(boost_smoothing),
        rows_valid=post,
        row_tile=tile,
        ragged=ragged,
    )

    out = pl.pallas_call(
        kernel,
        out_shape=jax.ShapeDtypeStruct((pre, num_tiles, 8, 128), jnp.float32),
        grid_spec=pltpu.PrefetchScalarGridSpec(
            num_scalar_prefetch=0,
            grid=(pre, num_tiles, num_c),
            in_specs=[
                # labels: same tiny block re-used across the channel axis
                pl.BlockSpec((1, tile, 1), lambda i, j, c: (i, j, 0)),
                # data: one contiguous (tile, V) slab per (row-tile, channel)
                pl.BlockSpec((1, 1, tile, v), lambda i, j, c: (i, c, j, 0)),
            ],
            out_specs=pl.BlockSpec((1, 1, 8, 128), lambda i, j, c: (i, j, 0, 0)),
            scratch_shapes=[pltpu.VMEM((tile, v), jnp.float32)    # logits
                            for _ in range(4)],                   # weights, -labels, acc
        ),
        compiler_params=pltpu.CompilerParams(
            dimension_semantics=("parallel", "parallel", "arbitrary"),
            vmem_limit_bytes=vmem_limit,
        ),
    )(labels3, data4)

    # Per-tile f32 partials (all lanes/sublanes of a tile hold the same value);
    # final reduction in f32.  PyTorch module returns a shape-(1,) tensor.
    # (Reduction order differs slightly from the torch reference; not bit-exact.)
    return jnp.sum(out[:, :, 0, 0]).reshape(1)


def _reference(data, labels, logit_width, ensemble_channel, smoothing, boost):
    """Pure-JAX mirror of the PyTorch forward for validation."""
    onehot = jax.nn.one_hot(labels, logit_width, dtype=jnp.float32)
    lab = (1.0 - smoothing) * onehot + smoothing / logit_width
    channels = jnp.moveaxis(data, ensemble_channel, 0).astype(jnp.float32)
    weights = jnp.ones_like(channels[0])
    logits = jnp.zeros_like(channels[0])
    loss = jnp.zeros((1,), jnp.float32)
    for cc in range(channels.shape[0]):
        logits = logits + channels[cc]
        entropy = -lab * jax.nn.log_softmax(logits, axis=-1)
        weighted = entropy * weights
        loss = loss + weighted.sum() / logit_width
        weights = entropy * (1 - boost) + boost
    return loss


if __name__ == "__main__":
    key = jax.random.PRNGKey(0)

    def run_case(shape_bcsv, smoothing, boost, max_row_tile, case_key):
        B, C, S, V = shape_bcsv
        k_data, k_lab = jax.random.split(case_key)
        data = jax.random.normal(k_data, (B, C, S, V), dtype=jnp.float32)
        labels = jax.random.randint(k_lab, (B, S), 0, V, dtype=jnp.int32)
        loss = cross_entropy_additive_boost(
            data, labels,
            logit_width=V,
            ensemble_channel=1,
            label_smoothing=smoothing,
            boost_smoothing=boost,
            max_row_tile=max_row_tile,
        )
        loss = jax.block_until_ready(loss)
        ref = _reference(data, labels, V, 1, smoothing, boost)
        assert loss.shape == (1,), loss.shape
        assert jnp.allclose(loss, ref, rtol=1e-4, atol=1e-5), (shape_bcsv, loss, ref)

    keys = jax.random.split(key, 5)
    # Single row tile per batch row; "parallel" grid over B.
    run_case((2, 3, 8, 128), 0.1, 0.3, 2048, keys[0])
    # Ragged rows with a forced small tile: multi-tile grid + in-kernel tail
    # masking of data & labels.
    run_case((2, 4, 13, 256), 0.0, 0.3, 8, keys[1])
    # Larger multi-tile case (3 row tiles, last ragged) with 4 channels.
    run_case((2, 4, 40, 256), 0.05, 0.25, 16, keys[2])
    # pre == 1: exercises the >= 2-row-tile clamp (v7x two-TensorCore path).
    run_case((1, 2, 24, 128), 0.0, 0.3, 2048, keys[3])
    # Full-extent (non multiple-of-8) row block: tile == rows == 13.
    run_case((2, 2, 13, 128), 0.1, 0.3, 2048, keys[4])

    print("KERNEL_OK")
</pallas_src>

<mosaic_0001>
module attributes {stable_mosaic.version = 11 : i64} {
  func.func @_ce_boost_kernel(%arg0: i32, %arg1: i32, %arg2: i32, %arg3: memref<1x8x1xi32, #tpu.memory_space<vmem>>, %arg4: memref<1x1x8x128xf32, #tpu.memory_space<vmem>>, %arg5: memref<1x1x8x128xf32, #tpu.memory_space<vmem>>, %arg6: memref<8x128xf32, #tpu.memory_space<vmem>>, %arg7: memref<8x128xf32, #tpu.memory_space<vmem>>, %arg8: memref<8x128xf32, #tpu.memory_space<vmem>>, %arg9: memref<8x128xf32, #tpu.memory_space<vmem>>) attributes {dimension_semantics = [#tpu.dimension_semantics<parallel>, #tpu.dimension_semantics<parallel>, #tpu.dimension_semantics<arbitrary>], iteration_bounds = array<i64: 2, 1, 3>, scalar_prefetch = 0 : i64, scratch_operands = 4 : i64, tpu.core_type = #tpu.core_type<tc>, window_params = [{transform_indices = @transform_0, window_bounds = array<i64: 1, 8, 1>}, {transform_indices = @transform_1, window_bounds = array<i64: 1, 1, 8, 128>}, {transform_indices = @transform_2, window_bounds = array<i64: 1, 1, 8, 128>}]} {
    %c0 = arith.constant 0 : index
    %c0_0 = arith.constant 0 : index
    %c0_1 = arith.constant 0 : index
    %c0_2 = arith.constant 0 : index
    %0 = vector.load %arg4[%c0, %c0_0, %c0_1, %c0_2] : memref<1x1x8x128xf32, #tpu.memory_space<vmem>>, vector<1x1x8x128xf32>
    %1 = vector.shape_cast %0 : vector<1x1x8x128xf32> to vector<8x128xf32>
    %c0_i32 = arith.constant 0 : i32
    %2 = arith.cmpi eq, %arg2, %c0_i32 : i32
    %3 = arith.extui %2 : i1 to i32
    %c0_i32_3 = arith.constant 0 : i32
    %4 = arith.cmpi ne, %3, %c0_i32_3 : i32
    scf.if %4 {
      %34 = tpu.iota {dimensions = array<i32: 1>} : vector<8x128xi32>
      %c0_22 = arith.constant 0 : index
      %c0_23 = arith.constant 0 : index
      %c0_24 = arith.constant 0 : index
      %35 = vector.load %arg3[%c0_22, %c0_23, %c0_24] : memref<1x8x1xi32, #tpu.memory_space<vmem>>, vector<1x8x1xi32>
      %36 = vector.shape_cast %35 : vector<1x8x1xi32> to vector<8x1xi32>
      %37 = vector.broadcast %36 : vector<8x1xi32> to vector<8x128xi32>
      %38 = arith.cmpi eq, %34, %37 : vector<8x128xi32>
      %39 = arith.extui %38 : vector<8x128xi1> to vector<8x128xi32>
      %40 = arith.sitofp %39 : vector<8x128xi32> to vector<8x128xf32>
      %cst_25 = arith.constant 0.899999976 : f32
      %41 = vector.broadcast %cst_25 : f32 to vector<8x128xf32>
      %42 = arith.mulf %41, %40 : vector<8x128xf32>
      %cst_26 = arith.constant 7.812500e-04 : f32
      %43 = vector.broadcast %cst_26 : f32 to vector<8x128xf32>
      %44 = arith.addf %42, %43 : vector<8x128xf32>
      %cst_27 = arith.constant 0.000000e+00 : f32
      %45 = vector.broadcast %cst_27 : f32 to vector<8x128xf32>
      %46 = arith.subf %45, %44 : vector<8x128xf32>
      %c0_28 = arith.constant 0 : index
      %c0_29 = arith.constant 0 : index
      %47 = vector.load %arg8[%c0_28, %c0_29] : memref<8x128xf32, #tpu.memory_space<vmem>>, vector<8x128xf32>
      tpu.vector_store %arg8[%c0_28, %c0_29], %46 {strides = array<i32>} : memref<8x128xf32, #tpu.memory_space<vmem>>, vector<8x128xf32>,
      %cst_30 = arith.constant 0.000000e+00 : f32
      %48 = vector.broadcast %cst_30 : f32 to vector<8x128xf32>
      %c0_31 = arith.constant 0 : index
      %c0_32 = arith.constant 0 : index
      %49 = vector.load %arg6[%c0_31, %c0_32] : memref<8x128xf32, #tpu.memory_space<vmem>>, vector<8x128xf32>
      tpu.vector_store %arg6[%c0_31, %c0_32], %48 {strides = array<i32>} : memref<8x128xf32, #tpu.memory_space<vmem>>, vector<8x128xf32>,
      %cst_33 = arith.constant 1.000000e+00 : f32
      %50 = vector.broadcast %cst_33 : f32 to vector<8x128xf32>
      %c0_34 = arith.constant 0 : index
      %c0_35 = arith.constant 0 : index
      %51 = vector.load %arg7[%c0_34, %c0_35] : memref<8x128xf32, #tpu.memory_space<vmem>>, vector<8x128xf32>
      tpu.vector_store %arg7[%c0_34, %c0_35], %50 {strides = array<i32>} : memref<8x128xf32, #tpu.memory_space<vmem>>, vector<8x128xf32>,
      %cst_36 = arith.constant 0.000000e+00 : f32
      %52 = vector.broadcast %cst_36 : f32 to vector<8x128xf32>
      %c0_37 = arith.constant 0 : index
      %c0_38 = arith.constant 0 : index
      %53 = vector.load %arg9[%c0_37, %c0_38] : memref<8x128xf32, #tpu.memory_space<vmem>>, vector<8x128xf32>
      tpu.vector_store %arg9[%c0_37, %c0_38], %52 {strides = array<i32>} : memref<8x128xf32, #tpu.memory_space<vmem>>, vector<8x128xf32>,
    } else {
    }
    %c0_4 = arith.constant 0 : index
    %c0_5 = arith.constant 0 : index
    %5 = vector.load %arg6[%c0_4, %c0_5] : memref<8x128xf32, #tpu.memory_space<vmem>>, vector<8x128xf32>
    %6 = arith.addf %5, %1 : vector<8x128xf32>
    %c0_6 = arith.constant 0 : index
    %c0_7 = arith.constant 0 : index
    %7 = vector.load %arg6[%c0_6, %c0_7] : memref<8x128xf32, #tpu.memory_space<vmem>>, vector<8x128xf32>
    tpu.vector_store %arg6[%c0_6, %c0_7], %6 {strides = array<i32>} : memref<8x128xf32, #tpu.memory_space<vmem>>, vector<8x128xf32>,
    %cst = arith.constant dense<0xFF800000> : vector<8xf32>
    %8 = vector.multi_reduction <maximumf>, %6, %cst [1] : vector<8x128xf32> to vector<8xf32>
    %9 = vector.shape_cast %8 : vector<8xf32> to vector<8x1xf32>
    %10 = vector.broadcast %9 : vector<8x1xf32> to vector<8x128xf32>
    %11 = arith.subf %6, %10 : vector<8x128xf32>
    %12 = math.exp %11 : vector<8x128xf32>
    %cst_8 = arith.constant dense<0.000000e+00> : vector<8xf32>
    %13 = vector.multi_reduction <add>, %12, %cst_8 [1] : vector<8x128xf32> to vector<8xf32>
    %14 = vector.shape_cast %13 : vector<8xf32> to vector<8x1xf32>
    %15 = math.log %14 : vector<8x1xf32>
    %16 = arith.addf %9, %15 : vector<8x1xf32>
    %c0_9 = arith.constant 0 : index
    %c0_10 = arith.constant 0 : index
    %17 = vector.load %arg8[%c0_9, %c0_10] : memref<8x128xf32, #tpu.memory_space<vmem>>, vector<8x128xf32>
    %18 = vector.broadcast %16 : vector<8x1xf32> to vector<8x128xf32>
    %19 = arith.subf %6, %18 : vector<8x128xf32>
    %20 = arith.mulf %17, %19 : vector<8x128xf32>
    %c0_11 = arith.constant 0 : index
    %c0_12 = arith.constant 0 : index
    %21 = vector.load %arg9[%c0_11, %c0_12] : memref<8x128xf32, #tpu.memory_space<vmem>>, vector<8x128xf32>
    %c0_13 = arith.constant 0 : index
    %c0_14 = arith.constant 0 : index
    %22 = vector.load %arg7[%c0_13, %c0_14] : memref<8x128xf32, #tpu.memory_space<vmem>>, vector<8x128xf32>
    %23 = arith.mulf %20, %22 : vector<8x128xf32>
    %24 = arith.addf %21, %23 : vector<8x128xf32>
    %c0_15 = arith.constant 0 : index
    %c0_16 = arith.constant 0 : index
    %25 = vector.load %arg9[%c0_15, %c0_16] : memref<8x128xf32, #tpu.memory_space<vmem>>, vector<8x128xf32>
    tpu.vector_store %arg9[%c0_15, %c0_16], %24 {strides = array<i32>} : memref<8x128xf32, #tpu.memory_space<vmem>>, vector<8x128xf32>,
    %cst_17 = arith.constant 0.699999988 : f32
    %26 = vector.broadcast %cst_17 : f32 to vector<8x128xf32>
    %27 = arith.mulf %20, %26 : vector<8x128xf32>
    %cst_18 = arith.constant 3.000000e-01 : f32
    %28 = vector.broadcast %cst_18 : f32 to vector<8x128xf32>
    %29 = arith.addf %27, %28 : vector<8x128xf32>
    %c0_19 = arith.constant 0 : index
    %c0_20 = arith.constant 0 : index
    %30 = vector.load %arg7[%c0_19, %c0_20] : memref<8x128xf32, #tpu.memory_space<vmem>>, vector<8x128xf32>
    tpu.vector_store %arg7[%c0_19, %c0_20], %29 {strides = array<i32>} : memref<8x128xf32, #tpu.memory_space<vmem>>, vector<8x128xf32>,
    %c2_i32 = arith.constant 2 : i32
    %31 = arith.cmpi eq, %arg2, %c2_i32 : i32
    %32 = arith.extui %31 : i1 to i32
    %c0_i32_21 = arith.constant 0 : i32
    %33 = arith.cmpi ne, %32, %c0_i32_21 : i32
    scf.if %33 {
      %c0_22 = arith.constant 0 : index
      %c0_23 = arith.constant 0 : index
      %34 = vector.load %arg9[%c0_22, %c0_23] : memref<8x128xf32, #tpu.memory_space<vmem>>, vector<8x128xf32>
      %35 = vector.shape_cast %34 : vector<8x128xf32> to vector<1x8x128xf32>
      %cst_24 = arith.constant dense<0.000000e+00> : vector<1xf32>
      %36 = vector.multi_reduction <add>, %35, %cst_24 [1, 2] : vector<1x8x128xf32> to vector<1xf32>
      %37 = vector.shape_cast %36 : vector<1xf32> to vector<1x1x1xf32>
      %38 = vector.extract %37[0, 0, 0] : f32 from vector<1x1x1xf32>
      %cst_25 = arith.constant 7.812500e-03 : f32
      %39 = arith.mulf %38, %cst_25 : f32
      %40 = vector.broadcast %39 : f32 to vector<1x1x8x128xf32>
      %c0_26 = arith.constant 0 : index
      %c0_27 = arith.constant 0 : index
      %c0_28 = arith.constant 0 : index
      %c0_29 = arith.constant 0 : index
      %41 = vector.load %arg5[%c0_26, %c0_27, %c0_28, %c0_29] : memref<1x1x8x128xf32, #tpu.memory_space<vmem>>, vector<1x1x8x128xf32>
      tpu.vector_store %arg5[%c0_26, %c0_27, %c0_28, %c0_29], %40 {strides = array<i32>} : memref<1x1x8x128xf32, #tpu.memory_space<vmem>>, vector<1x1x8x128xf32>,
    } else {
    }
    return
  }
  func.func @transform_0(%arg0: i32, %arg1: i32, %arg2: i32) -> (i32, i32, i32) {
    %c0_i32 = arith.constant 0 : i32
    %c0_i32_0 = arith.constant 0 : i32
    return %arg0, %arg1, %c0_i32 : i32, i32, i32
  }
  func.func @transform_1(%arg0: i32, %arg1: i32, %arg2: i32) -> (i32, i32, i32, i32) {
    %c0_i32 = arith.constant 0 : i32
    %c0_i32_0 = arith.constant 0 : i32
    return %arg0, %arg2, %arg1, %c0_i32 : i32, i32, i32, i32
  }
  func.func @transform_2(%arg0: i32, %arg1: i32, %arg2: i32) -> (i32, i32, i32, i32) {
    %c0_i32 = arith.constant 0 : i32
    %c0_i32_0 = arith.constant 0 : i32
    %c0_i32_1 = arith.constant 0 : i32
    return %arg0, %arg1, %c0_i32, %c0_i32_0 : i32, i32, i32, i32
  }
}

</mosaic_0001>

<bundles_post_ra>
// kernel: tpu_custom_call.1
= control target key start
LH: loop header
LB: loop body
LE: loop exit
PB: predicated region body
PF: predicated region fallthrough
CT: control target
= control target key end

     0   :  { %7 = vsyncpa [#allocation7], 0  ;;  %s885_s0 = inlined_call_operand.vmem [shape: s32[2,8,1], index: 0, kind: input, shape index: {}]   ;;  %s886_s1 = inlined_call_operand.hbm [shape: f32[2,3,8,128], index: 1, kind: input, shape index: {}]   ;;  %s887_s2 = inlined_call_operand.hbm [shape: f32[2,1,8,128], index: 2, kind: output, shape index: {}]  }
   0x1   :  { %9 = vsyncpa [#allocation7 + $0x1], 0 }
   0x2   :  { %10 = vsyncpa [#allocation8], 0 }
   0x3   :  { %12 = vsyncpa [#allocation8 + $0x1], 0  ;;  %s701_s9 = smov 0   ;;  %s703_s10 = smov 0  }
   0x4   :  { %s705_s11 = smov 0   ;;  %s707_s12 = smov 0  }
   0x5   :  { %s709_s13 = smov 0   ;;  %s711_s14 = smov 0  }
   0x6   :  { %s713_s15 = smov 0   ;;  %s715_s16 = smov 0  }
   0x7   :  { %s717_s17 = smov 0   ;;  %s719_s18 = smov 0  }
   0x8   :  { %s721_s19 = smov 0  }
   0x9 LB: > { %s399_s20 = sadd.s32 4294967295, %s681_s19   ;;  %s400_s21 = sadd.s32 4294967294, %s681_s19   ;;  %s681_s19 = sphi %s721_s19, %s18_s19   ;;  %s677_s18 = sphi %s719_s18, %s907_s18   ;;  %s673_s17 = sphi %s717_s17, %s906_s17   ;;  %s669_s16 = sphi %s715_s16, %s905_s16   ;;  %s665_s15 = sphi %s713_s15, %s904_s15   ;;  %s661_s14 = sphi %s711_s14, %s903_s14   ;;  %s657_s13 = sphi %s709_s13, %s902_s13   ;;  %s653_s12 = sphi %s707_s12, %s901_s12   ;;  %s649_s11 = sphi %s705_s11, %s900_s11   ;;  %s645_s10 = sphi %s703_s10, %s899_s10   ;;  %s641_s9 = sphi %s701_s9, %s898_s9  }
   0xa   : > { %s30_s22 = sadd.s32 1, %s673_s17  ;;  %s37_s23 = sadd.s32 1, %s677_s18 }
   0xb   : > { %p31_p0 = scmp.ge.s32.totalorder %s30_s22, 3  ;;  %s76_s24 = sadd.s32 1, %s661_s14 }
   0xc   : > { %p83_p1 = scmp.ne.s32.totalorder %s661_s14, %s657_s13  ;;  %p84_p2 = scmp.eq.s32.totalorder %s681_s19, 0 }
   0xd   : > { %s909_s22 = smov (%p31_p0, %s30_s22), 0  ;;  %s911_s23 = smov (!%p31_p0, %s37_s23), %s677_s18 }
   0xe   : > { %890 = sst [smem:[#allocation12_spill]] %s909_s22  ;;  %s70_s25 = ssub.s32 %s673_s17, %s909_s22 }
   0xf   : > { %p767_p3 = por %p84_p2, %p83_p1  ;;  %p39_p4 = scmp.ge.s32.totalorder %s911_s23, 2 }
  0x10   : > { %p89_p5 = scmp.ne.s32.totalorder %s657_s13, %s653_s12  ;;  %p90_p6 = scmp.eq.s32.totalorder %s399_s20, 0 }
  0x11   : > { %s104_s27 = sadd.s32 1, %s649_s11  ;;  %s913_s23 = smov (%p39_p4, %s911_s23), 0 }
  0x12   : > { %892 = sst [smem:[#allocation13_spill]] %s913_s23  ;;  %p775_p7 = por %p90_p6, %p89_p5 }
  0x13   : > { %p114_p8 = scmp.ne.s32.totalorder %s649_s11, %s645_s10  ;;  %s69_s29 = ssub.s32 %s677_s18, %s913_s23 }
  0x14   : > { %p115_p9 = scmp.eq.s32.totalorder %s399_s20, 5  ;;  %s71_s30 = sor.u32 %s70_s25, %s69_s29 }
  0x15   : > { %p102_p10 = scmp.eq.s32.totalorder %s69_s29, 0  ;;  %p74_p11 = scmp.eq.s32.totalorder %s71_s30, 0 }
  0x16   : > { %p783_p12 = por %p115_p9, %p114_p8  ;;  %p120_p13 = scmp.ne.s32.totalorder %s645_s10, %s641_s9 }
  0x17   : > { %s788_s4 = scalar_select %p102_p10, %s649_s11, %s104_s27  }
  0x18   : > { %s791_s5 = scalar_select %p74_p11, %s661_s14, %s76_s24  }
  0x19   : > { %p121_p0 = scmp.eq.s32.totalorder %s400_s21, 5  ;;  %p431_p1 = scmp.lt.s32.totalorder %s681_s19, 6 }
  0x1a   : > { %s151_s7 = sand.u32 1, %s661_s14   ;;  %s416_s12 = smul.u32 3, %s677_s18 }
  0x1b   : > { %p796_p2 = por %p121_p0, %p120_p13  ;;  %s403_s8 = sshll.u32 %s151_s7, 3 }
  0x1c   : > { %s155_s20 = scalar_lea.vmem [#allocation6], %s403_s8  ;;  %p424_p4 = pnand %p431_p1, %p767_p3 }
  0x1d   : > { %s166_s25 = sshll.u32 %s155_s20, 4  ;;  %s160_s27 = sadd.s32 %s673_s17, %s416_s12  ;;  %s167_s25 = int_to_ptr.vmem [resolvable:$true] %s166_s25 }
  0x1e   : > { %s404_s29 = sshll.u32 %s160_s27, 3  ;;  %p405_p5 = scmp.ge.s32.totalorder %s681_s19, 1 }
  0x1f   : > { %s162_s23 = scalar_lea.hbm %s886_s1, %s404_s29  ;;  %p171_p6 = scmp.lt.s32.totalorder %s681_s19, 7 }
  0x20   : > { %s164_s21 = sshll.u32 %s162_s23, 4  ;;  %s152_s22 = scalar_lea.sflag [#allocation7], %s151_s7  ;;  %s165_s21 = int_to_ptr.hbm [resolvable:$true] %s164_s21 }
  0x21   : > { %426 = dma.hbm_to_vmem [thread:$0]  (!%p424_p4), %s165_s21, 128, %s167_s25, %s152_s22  }
  0x22   : > { %p172_p8 = pnand %p405_p5, %p171_p6 }
  0x23   : > { %s177_s8 = sand.u32 (!%p172_p8), 1, %s657_s13  }
  0x24   : > { %175 = sbr.rel (%p172_p8) target bundleno = 646 (0x286), region = 28  ;;  %s406_s26 = sshll.u32 (!%p172_p8), %s177_s8, 3 }
  0x25   : > { %s178_s20 = scalar_lea.sflag (!%p172_p8), [#allocation7], %s177_s8  ;;  %s181_s12 = scalar_lea.vmem (!%p172_p8), [#allocation6], %s406_s26 }
  0x29   : > { %632 = dma.done.wait (%p775_p7), %s178_s20, 128  }
  0x2a   : > { %634 = vsyncadd (%p775_p7), %s178_s20, 4294967168  ;;  %s207_s23 = sand.u32 1, %s645_s10   ;;  %p210_p3 = scmp.lt.s32.totalorder %s669_s16, 1  ;;  %v217_v0 = vld [vmem:[%s181_s12] sm:$0xff] }
  0x2b   : > { %s819_s22 = sshll.u32 %s207_s23, 3  ;;  %p409_p7 = scmp.ne.s32.totalorder %s665_s15, 0 }
  0x2c   : > { %s211_s7 = scalar_select %p210_p3, %s669_s16, 1 }
  0x2d   : > { %s209_s30 = scalar_lea.vmem [#allocation9], %s819_s22  ;;  %221 = sbr.rel (%p409_p7) target bundleno = 176 (0xb0), region = 36 }
  0x2e   : > { %s408_s25 = sshll.u32 %s211_s7, 3 }
  0x2f   : > { %s216_s24 = scalar_lea.vmem %s885_s0, %s408_s25 }
  0x32   : > { %v224_v1 = vld [vmem:[%s216_s24] sm:$0xff]  ;;  %v683_v2 = vmov 0   ;;  %v684_v3 = vmov 0.0   ;;  %v685_v4 = vmov 1.0   ;;  %v222_v5 = vlaneseq }
  0x33   : > { %524 = vset.pattern.permute.xlu0 %v683_v2  ;;  %235 = vst [vmem:[#allocation2] sm:$0xff] %v684_v3 }
  0x34   : > { %226 = vperm.xlu0 %524, %v224_v1   ;;  %237 = vst [vmem:[#allocation5] sm:$0xff] %v684_v3  ;;  %v223_v6 = vand.u32 127, %v222_v5 }
  0x35   : > { %236 = vst [vmem:[#allocation3] sm:$0xff] %v685_v4 }
  0xa6   : > { %v227_v7 = vpop.permute.xlu0 %226 }
  0xa7   : > { %vm228_vm0 = vcmp.eq.s32.totalorder %v223_v6, %v227_v7 }
  0xa8   : > { %v410_v8 = vsel %vm228_vm0, 1.0, %v684_v3 }
  0xa9   : > { %v231_v9 = vmul.f32 0.9, %v410_v8 }
  0xab   : > { %v232_v10 = vadd.f32 0.00078125, %v231_v9 }
  0xad   : > { %v233_v11 = vsub.f32 0.0, %v232_v10 }
  0xaf   : > { %234 = vst [vmem:[#allocation4] sm:$0xff] %v233_v11 }
  0xb0 PF: > { %v238_v12 = vld [vmem:[#allocation2] sm:$0xff]  ;;  %v255_v24 = vld [vmem:[#allocation3] sm:$0xff]  ;;  %v254_v26 = vld [vmem:[#allocation5] sm:$0xff]  ;;  %p411_p9 = scmp.ne.s32.totalorder %s665_s15, 2 }
  0xb1   : > { %v239_v13 = vadd.f32 %v238_v12, %v217_v0 }
  0xb3   : > { %241 = vmax.xlane.f32.xlu0 %v239_v13  ;;  %240 = vst [vmem:[#allocation2] sm:$0xff] %v239_v13 }
  0xb6   : > { %v251_v22 = vld [vmem:[#allocation4] sm:$0xff] }
 0x126   : > { %v242_v14 = vpop.xlane.xlu0 %241 }
 0x127   : > { %v243_v15 = vsub.f32 %v239_v13, %v242_v14 }
 0x129   : > { %v244_v16 = vmul.f32 1.442695, %v243_v15 }
 0x12b   : > { %525 = vpow2.f32 %v244_v16 }
 0x131   : > { %v526_v17 = vpop.eup %525 }
 0x132   : > { %246 = vadd.xlane.f32.xlu0 %v526_v17 }
 0x1a5   : > { %v247_v18 = vpop.xlane.xlu0 %246 }
 0x1a6   : > { %527 = vlog2.f32 %v247_v18 }
 0x1ac   : > { %v528_v19 = vpop.eup %527 }
 0x1ad   : > { %v249_v20 = vmul.f32 0.6931472, %v528_v19 }
 0x1af   : > { %v250_v21 = vadd.f32 %v249_v20, %v242_v14 }
 0x1b1   : > { %v252_v23 = vsub.f32 %v239_v13, %v250_v21 }
 0x1b3   : > { %v253_v25 = vmul.f32 %v252_v23, %v251_v22 }
 0x1b5   : > { %v256_v27 = vmul.f32 %v255_v24, %v253_v25  ;;  %v259_v28 = vmul.f32 0.7, %v253_v25 }
 0x1b6   : > { %265 = sbr.rel (%p411_p9) target bundleno = 631 (0x277), region = 40 }
 0x1b7   : > { %v257_v29 = vadd.f32 %v256_v27, %v254_v26  ;;  %v260_v30 = vadd.f32 0.3, %v259_v28 }
 0x1b9   : > { %258 = vst [vmem:[#allocation5] sm:$0xff] %v257_v29 }
 0x1ba   : > { %261 = vst [vmem:[#allocation3] sm:$0xff] %v260_v30 }
 0x1c0   : > { %v266_v31 = vld [vmem:[#allocation5] sm:$0xff] }
 0x1c1   : > { %267 = vadd.xlane.f32.xlu0 %v266_v31 }
 0x234   : > { %v268_v32 = vpop.xlane.xlu0 %267 }
 0x235   : > { %v269_v33 = vrot.slane %v268_v32, 4 }
 0x237   : > { %v270_v34 = vadd.f32 %v269_v33, %v268_v32 }
 0x239   : > { %v271_v35 = vrot.slane %v270_v34, 2 }
 0x23b   : > { %v272_v36 = vadd.f32 %v271_v35, %v270_v34 }
 0x23d   : > { %v273_v37 = vrot.slane %v272_v36, 1 }
 0x23f   : > { %v274_v38 = vadd.f32 %v273_v37, %v272_v36 }
 0x241   : > { %417 = vpush %v274_v38 }
 0x272   : > { %s418_s28 = spop %417 }
 0x273   : > { %s276_s21 = smul.f32 0.0078125, %s418_s28 }
 0x275   : > { %v277_v39 = vstv %s276_s21 }
 0x276   : > { %278 = vst [vmem:[%s209_s30] sm:$0xff] %v277_v39 }
 0x277 PF: > { %s413_s15 = sshll.u32 %s669_s16, 3  ;;  %s293_s12 = sshll.u32 %s209_s30, 4  ;;  %s294_s12 = int_to_ptr.vmem [resolvable:$true] %s293_s12 }
 0x278   : > { %s291_s20 = scalar_lea.hbm %s887_s2, %s413_s15  ;;  %s280_s25 = scalar_lea.sflag [#allocation8], %s207_s23 }
 0x279   : > { %s295_s7 = sshll.u32 %s291_s20, 4  ;;  %s579_s28 = scalar_lea.hbm %s887_s2, 16  ;;  %s296_s7 = int_to_ptr.hbm [resolvable:$true] %s295_s7 }
 0x27a   : > { %s573_s27 = sshra.s32 %s296_s7, 4  ;;  %s574_s27 = int_to_ptr.hbm [resolvable:$true] %s573_s27 }
 0x27b   : > { %s575_s29 = scalar_lea.hbm %s574_s27, 8  ;;  %p580_p0 = scmp.lt.s32.totalorder %s574_s27, %s887_s2 }
 0x27c   : > { %p576_p10 = scmp.ne.s32.totalorder %s574_s27, %s575_s29  ;;  %p581_p1 = scmp.lt.s32.totalorder %s579_s28, %s575_s29 }
 0x27e   : > { %p577_p11 = pnand %p576_p10, %p783_p12  ;;  %p582_p4 = por %p581_p1, %p580_p0 }
 0x280   : > { %p578_p13 = pneg %p577_p11 }
 0x282   : > { %p583_p5 = pnand %p582_p4, %p578_p13 }
 0x284   : > { %586 = shalt.err (!%p583_p5)
}
 0x285   : > { %421 = dma.vmem_to_hbm [thread:$0]  (%p783_p12), %s294_s12, 128, %s296_s7, %s280_s25  }
 0x286 PF: > { %p432_p6 = scmp.ge.s32.totalorder %s681_s19, 2  ;;  %s307_s23 = sand.u32 1, %s641_s9  }
 0x287   : > { %s308_s22 = scalar_lea.sflag [#allocation8], %s307_s23 }
 0x288   : > { %p428_p8 = pnand %p432_p6, %p796_p2 }
 0x28a   : > { %p429_p3 = pneg %p428_p8 }
 0x28c   : > { %636 = dma.done.wait (%p429_p3), %s308_s22, 128  }
 0x28d   : > { %638 = vsyncadd (%p429_p3), %s308_s22, 4294967168  ;;  %s18_s19 = sadd.s32 1, %s681_s19   ;;  %s896_s3 = sld [smem:[#allocation12_spill]] }
 0x28e   : > { %p15_p7 = scmp.ge.s32.totalorder %s18_s19, 8   ;;  %s897_s30 = sld [smem:[#allocation13_spill]] }
 0x28f   : > { %s898_s9 = smov %s645_s10  ;;  %s899_s10 = smov %s649_s11 }
 0x290   : > { %s900_s11 = smov %s788_s4  ;;  %s901_s12 = smov %s657_s13 }
 0x291   : > { %s902_s13 = smov %s661_s14  ;;  %s903_s14 = smov %s791_s5 }
 0x292   : > { %s904_s15 = smov %s673_s17  ;;  %s905_s16 = smov %s677_s18 }
 0x293   : > { %s906_s17 = smov %s896_s3  ;;  %17 = sbr.rel (!%p15_p7) target bundleno = 9 (0x9), region = 84 }
 0x294   : > { %s907_s18 = smov %s897_s30 }
 0x298   :  { %314 = vsyncpa [#allocation7], 1 }
 0x299   :  { %316 = vsyncpa [#allocation7 + $0x1], 1 }
 0x29a   :  { %317 = vsyncpa [#allocation8], 1 }
 0x29b   :  { %319 = vsyncpa [#allocation8 + $0x1], 1 }

</bundles_post_ra>
